<compile_context>
chip_gen: v5e
topology: v5e:2x2
jax: 0.10.0
libtpu: 0.0.40
codegen_flags: <defaults>
</compile_context>

<pallas_src>
import jax
import jax.numpy as jnp
from jax.experimental import pallas as pl
from jax.experimental.pallas import tpu as pltpu

# ----- model dimensions (TD-Gammon style) -----------------------------------
IN_FEATURES = 198      # backgammon observation size
HIDDEN = 40            # hidden units
HID_P = 128            # hidden padded to one 128-lane tile
TB_MAX = 4096          # max batch tile (f32 x tile ~3.2 MB -> ~87% of HBM roofline)


def _round_up(n, m):
    return (n + m - 1) // m * m


def _sigmoid(z):
    # sigmoid(z) == 0.5*(tanh(z/2)+1): exactly one EUP transcendental per
    # element (avoids a possible exp + divide lowering of lax.logistic).
    return 0.5 * (jnp.tanh(0.5 * z) + 1.0)


def _mlp_kernel(x_ref, w1_ref, b1_ref, w2_ref, b2_ref, o_ref):
    """Fused 2-layer sigmoid MLP on one batch tile.

    x_ref : [TB, 198]   f32  (cast to bf16 in-register for the MXU)
    w1_ref: [198, 128]  bf16 (cols >= HIDDEN are zero)
    b1_ref: [1, 128]    f32  (cols >= HIDDEN are zero)
    w2_ref: [128, 1]    f32  (rows >= HIDDEN are zero -> padded hidden units'
                              sigmoid(0)=0.5 contribute 0.5*0 = 0)
    b2_ref: [1, 1]      f32
    o_ref : [TB, 1]     f32
    """
    # Layer 1 on the MXU: bf16 operands, f32 accumulate.
    x = x_ref[...].astype(jnp.bfloat16)           # in-kernel cast: free VPU work
    h = jnp.dot(x, w1_ref[...], preferred_element_type=jnp.float32)   # [TB, 128]
    h = _sigmoid(h + b1_ref[...])                 # one tanh (EUP) per element, f32

    # Layer 2 on the MXU as a matvec (N=1): frees VPU/XLU slots entirely.
    y = jnp.dot(h, w2_ref[...], preferred_element_type=jnp.float32)   # [TB, 1]
    o_ref[...] = _sigmoid(y + b2_ref[...])


def _choose_tile(batch):
    """Batch tile: multiple of 16, <= TB_MAX, and >= 2 grid steps whenever the
    batch is larger than one tile (so v7x's 2 TensorCores both get work)."""
    if batch <= 1024:
        return max(16, _round_up(batch, 16))       # single tile
    if batch <= TB_MAX:
        return _round_up(-(-batch // 2), 16)       # exactly 2 tiles
    return TB_MAX


@jax.jit
def td_gammon_forward(x, w1, b1, w2, b2):
    """x: [B, IN_FEATURES] float32 -> p: [B, 1] float32 in (0, 1)."""
    B, F = x.shape
    TB = _choose_tile(B)
    grid = (pl.cdiv(B, TB),)                       # partial last block is masked

    return pl.pallas_call(
        _mlp_kernel,
        out_shape=jax.ShapeDtypeStruct((B, 1), jnp.float32),
        grid=grid,
        in_specs=[
            # x: batch-tiled f32 stream (dominant HBM traffic).
            pl.BlockSpec((TB, F), lambda i: (i, 0)),
            # Weights/biases: constant block index -> fetched once, VMEM-resident.
            pl.BlockSpec((IN_FEATURES, HID_P), lambda i: (0, 0)),
            pl.BlockSpec((1, HID_P), lambda i: (0, 0)),
            pl.BlockSpec((HID_P, 1), lambda i: (0, 0)),
            pl.BlockSpec((1, 1), lambda i: (0, 0)),
        ],
        out_specs=pl.BlockSpec((TB, 1), lambda i: (i, 0)),
        compiler_params=pltpu.CompilerParams(
            dimension_semantics=("parallel",),     # v7x: 2 TCs split the batch axis
            vmem_limit_bytes=40 * 1024 * 1024,     # headroom for the 4096-row tile
        ),
    )(x, w1, b1, w2, b2)


def init_params(key):
    """PyTorch-Linear-style init (uniform(+-1/sqrt(fan_in))), placed into
    zero-padded TPU-shaped buffers.  W1 stored bf16, the rest f32.
    Invariant relied on by the kernel: b1[:, HIDDEN:] == 0 and
    w2[HIDDEN:, :] == 0 so padded hidden lanes contribute exactly 0."""
    k1, k2, k3, k4 = jax.random.split(key, 4)

    bound1 = 1.0 / jnp.sqrt(float(IN_FEATURES))
    w1_core = jax.random.uniform(k1, (IN_FEATURES, HIDDEN), jnp.float32,
                                 minval=-bound1, maxval=bound1)
    b1_core = jax.random.uniform(k2, (HIDDEN,), jnp.float32,
                                 minval=-bound1, maxval=bound1)

    bound2 = 1.0 / jnp.sqrt(float(HIDDEN))
    w2_core = jax.random.uniform(k3, (HIDDEN,), jnp.float32,
                                 minval=-bound2, maxval=bound2)
    b2_core = jax.random.uniform(k4, (1,), jnp.float32,
                                 minval=-bound2, maxval=bound2)

    w1 = (jnp.zeros((IN_FEATURES, HID_P), jnp.float32)
          .at[:, :HIDDEN].set(w1_core)).astype(jnp.bfloat16)
    b1 = jnp.zeros((1, HID_P), jnp.float32).at[0, :HIDDEN].set(b1_core)
    w2 = jnp.zeros((HID_P, 1), jnp.float32).at[:HIDDEN, 0].set(w2_core)
    b2 = b2_core.reshape(1, 1)
    return w1, b1, w2, b2


def reference_forward(x, w1, b1, w2, b2):
    """Plain-JAX reference with identical dtypes/math, for correctness checks."""
    h = _sigmoid(jnp.dot(x.astype(jnp.bfloat16), w1,
                         preferred_element_type=jnp.float32) + b1)
    y = jnp.dot(h, w2, preferred_element_type=jnp.float32) + b2
    return _sigmoid(y)


if __name__ == "__main__":
    key = jax.random.PRNGKey(0)
    pk, xk = jax.random.split(key)

    # alpha / lambda_param are TD-learning hyperparameters; they do not enter
    # the forward pass (kept for parity with BaseModel.__init__).
    alpha, lambda_param = 0.1, 0.7  # noqa: F841

    w1, b1, w2, b2 = init_params(pk)

    B = 8  # small batch of board observations
    x = jax.random.uniform(xk, (B, IN_FEATURES), jnp.float32)

    p = jax.block_until_ready(td_gammon_forward(x, w1, b1, w2, b2))
    p_ref = reference_forward(x, w1, b1, w2, b2)

    assert p.shape == (B, 1)
    assert bool(jnp.all(jnp.isfinite(p)))
    assert bool(jnp.all((p > 0.0) & (p < 1.0)))
    assert jnp.allclose(p, p_ref, atol=1e-4, rtol=1e-4), "mismatch vs reference"

    print("KERNEL_OK")
</pallas_src>

<mosaic_0001>
module attributes {stable_mosaic.version = 11 : i64} {
  func.func @_mlp_kernel(%arg0: i32, %arg1: memref<16x198xf32, #tpu.memory_space<vmem>>, %arg2: memref<198x128xbf16, #tpu.memory_space<vmem>>, %arg3: memref<1x128xf32, #tpu.memory_space<vmem>>, %arg4: memref<128x1xf32, #tpu.memory_space<vmem>>, %arg5: memref<1x1xf32, #tpu.memory_space<vmem>>, %arg6: memref<16x1xf32, #tpu.memory_space<vmem>>) attributes {dimension_semantics = [#tpu.dimension_semantics<parallel>], iteration_bounds = array<i64: 1>, scalar_prefetch = 0 : i64, scratch_operands = 0 : i64, tpu.core_type = #tpu.core_type<tc>, window_params = [{transform_indices = @transform_0, window_bounds = array<i64: 16, 198>}, {pipeline_mode = #tpu.pipeline_mode<synchronous>, transform_indices = @transform_1, window_bounds = array<i64: 198, 128>}, {pipeline_mode = #tpu.pipeline_mode<synchronous>, transform_indices = @transform_2, window_bounds = array<i64: 1, 128>}, {pipeline_mode = #tpu.pipeline_mode<synchronous>, transform_indices = @transform_3, window_bounds = array<i64: 128, 1>}, {pipeline_mode = #tpu.pipeline_mode<synchronous>, transform_indices = @transform_4, window_bounds = array<i64: 1, 1>}, {transform_indices = @transform_5, window_bounds = array<i64: 16, 1>}]} {
    %c0 = arith.constant 0 : index
    %c0_0 = arith.constant 0 : index
    %0 = vector.load %arg1[%c0, %c0_0] : memref<16x198xf32, #tpu.memory_space<vmem>>, vector<16x198xf32>
    %1 = arith.truncf %0 : vector<16x198xf32> to vector<16x198xbf16>
    %c0_1 = arith.constant 0 : index
    %c0_2 = arith.constant 0 : index
    %2 = vector.load %arg2[%c0_1, %c0_2] : memref<198x128xbf16, #tpu.memory_space<vmem>>, vector<198x128xbf16>
    %cst = arith.constant dense<0.000000e+00> : vector<16x128xf32>
    %3 = tpu.matmul %1, %2, %cst {dimension_numbers = #tpu.dot_dimension_numbers<[1], [0], [0], [1], [0, 0, 1, 1], [], []>} : vector<16x198xbf16>, vector<198x128xbf16>, vector<16x128xf32> -> vector<16x128xf32>
    %c0_3 = arith.constant 0 : index
    %c0_4 = arith.constant 0 : index
    %4 = vector.load %arg3[%c0_3, %c0_4] : memref<1x128xf32, #tpu.memory_space<vmem>>, vector<1x128xf32>
    %5 = vector.broadcast %4 : vector<1x128xf32> to vector<16x128xf32>
    %6 = arith.addf %3, %5 : vector<16x128xf32>
    %cst_5 = arith.constant 5.000000e-01 : f32
    %7 = vector.broadcast %cst_5 : f32 to vector<16x128xf32>
    %8 = arith.mulf %7, %6 : vector<16x128xf32>
    %9 = math.tanh %8 : vector<16x128xf32>
    %cst_6 = arith.constant 1.000000e+00 : f32
    %10 = vector.broadcast %cst_6 : f32 to vector<16x128xf32>
    %11 = arith.addf %9, %10 : vector<16x128xf32>
    %cst_7 = arith.constant 5.000000e-01 : f32
    %12 = vector.broadcast %cst_7 : f32 to vector<16x128xf32>
    %13 = arith.mulf %12, %11 : vector<16x128xf32>
    %c0_8 = arith.constant 0 : index
    %c0_9 = arith.constant 0 : index
    %14 = vector.load %arg4[%c0_8, %c0_9] : memref<128x1xf32, #tpu.memory_space<vmem>>, vector<128x1xf32>
    %cst_10 = arith.constant dense<0.000000e+00> : vector<16x1xf32>
    %15 = tpu.matmul %13, %14, %cst_10 {dimension_numbers = #tpu.dot_dimension_numbers<[1], [0], [0], [1], [0, 0, 1, 1], [], []>} : vector<16x128xf32>, vector<128x1xf32>, vector<16x1xf32> -> vector<16x1xf32>
    %c0_11 = arith.constant 0 : index
    %c0_12 = arith.constant 0 : index
    %16 = vector.load %arg5[%c0_11, %c0_12] : memref<1x1xf32, #tpu.memory_space<vmem>>, vector<1x1xf32>
    %17 = vector.broadcast %16 : vector<1x1xf32> to vector<16x1xf32>
    %18 = arith.addf %15, %17 : vector<16x1xf32>
    %cst_13 = arith.constant 5.000000e-01 : f32
    %19 = vector.broadcast %cst_13 : f32 to vector<16x1xf32>
    %20 = arith.mulf %19, %18 : vector<16x1xf32>
    %21 = math.tanh %20 : vector<16x1xf32>
    %cst_14 = arith.constant 1.000000e+00 : f32
    %22 = vector.broadcast %cst_14 : f32 to vector<16x1xf32>
    %23 = arith.addf %21, %22 : vector<16x1xf32>
    %cst_15 = arith.constant 5.000000e-01 : f32
    %24 = vector.broadcast %cst_15 : f32 to vector<16x1xf32>
    %25 = arith.mulf %24, %23 : vector<16x1xf32>
    %c0_16 = arith.constant 0 : index
    %c0_17 = arith.constant 0 : index
    %26 = vector.load %arg6[%c0_16, %c0_17] : memref<16x1xf32, #tpu.memory_space<vmem>>, vector<16x1xf32>
    tpu.vector_store %arg6[%c0_16, %c0_17], %25 {strides = array<i32>} : memref<16x1xf32, #tpu.memory_space<vmem>>, vector<16x1xf32>,
    return
  }
  func.func @transform_0(%arg0: i32) -> (i32, i32) {
    %c0_i32 = arith.constant 0 : i32
    %c0_i32_0 = arith.constant 0 : i32
    return %arg0, %c0_i32 : i32, i32
  }
  func.func @transform_1(%arg0: i32) -> (i32, i32) {
    %c0_i32 = arith.constant 0 : i32
    %c0_i32_0 = arith.constant 0 : i32
    %c0_i32_1 = arith.constant 0 : i32
    return %c0_i32, %c0_i32_0 : i32, i32
  }
  func.func @transform_2(%arg0: i32) -> (i32, i32) {
    %c0_i32 = arith.constant 0 : i32
    %c0_i32_0 = arith.constant 0 : i32
    %c0_i32_1 = arith.constant 0 : i32
    return %c0_i32, %c0_i32_0 : i32, i32
  }
  func.func @transform_3(%arg0: i32) -> (i32, i32) {
    %c0_i32 = arith.constant 0 : i32
    %c0_i32_0 = arith.constant 0 : i32
    %c0_i32_1 = arith.constant 0 : i32
    return %c0_i32, %c0_i32_0 : i32, i32
  }
  func.func @transform_4(%arg0: i32) -> (i32, i32) {
    %c0_i32 = arith.constant 0 : i32
    %c0_i32_0 = arith.constant 0 : i32
    %c0_i32_1 = arith.constant 0 : i32
    return %c0_i32, %c0_i32_0 : i32, i32
  }
  func.func @transform_5(%arg0: i32) -> (i32, i32) {
    %c0_i32 = arith.constant 0 : i32
    %c0_i32_0 = arith.constant 0 : i32
    return %arg0, %c0_i32 : i32, i32
  }
}

</mosaic_0001>

<bundles_post_ra>
// kernel: td_gammon_forward.1
= control target key start
LH: loop header
LB: loop body
LE: loop exit
PB: predicated region body
PF: predicated region fallthrough
CT: control target
= control target key end

     0   :  { %s481_s0 = inlined_call_operand.vmem [shape: f32[8,198], index: 0, kind: input, shape index: {}]   ;;  %s482_s1 = inlined_call_operand.vmem [shape: bf16[198,128], index: 1, kind: input, shape index: {}]   ;;  %s483_s2 = inlined_call_operand.vmem [shape: f32[1,128], index: 2, kind: input, shape index: {}]   ;;  %s484_s3 = inlined_call_operand.vmem [shape: f32[128,1], index: 3, kind: input, shape index: {}]   ;;  %s485_s4 = inlined_call_operand.<no memory space> [shape: f32[1,1], index: 4, kind: input, shape index: {}]   ;;  %s486_s5 = inlined_call_operand.vmem [shape: f32[8,1], index: 5, kind: output, shape index: {}]  }
   0x1   :  { %v10_v0 = vstv %s485_s4 }
   0x2   :  { %11 = vst [vmem:[#allocation2] sm:$0x1] %v10_v0 }
   0x3   :  { %v328_v1 = vld [vmem:[%s482_s1 + $0x38] sm:$0xff]  ;;  %v53_v2 = vld [vmem:[%s482_s1 + $0x60] sm:$0x7]  ;;  %v327_v4 = vld [vmem:[%s482_s1 + $0x30] sm:$0xff]  ;;  %vm137_vm0 = vcmask 1042432   ;;  %vm133_vm1 = vcmask 572416  }
   0x4   :  { %v107_v3 = vunpack.c.l.b16 %v53_v2  ;;  %141 = vmatpush.bf16.msra.mxu0 %v328_v1  ;;  %v192_v7 = vld [vmem:[%s484_s3 + $0x78] sm:$0xff]  ;;  %v326_v8 = vld [vmem:[%s482_s1 + $0x28] sm:$0xff]  ;;  %v191_v10 = vld [vmem:[%s484_s3 + $0x70] sm:$0xff]  ;;  %vm228_vm2 = vcmask 7168  }
   0x5   :  { %v332_v9 = vld [vmem:[%s482_s1 + $0x58] sm:$0xff]  ;;  %197 = vmatpush.msra.mxu2 %v192_v7  ;;  %v190_v11 = vld [vmem:[%s484_s3 + $0x68] sm:$0xff]  ;;  %v325_v12 = vld [vmem:[%s482_s1 + $0x20] sm:$0xff] }
   0x6   :  { %v120_v5 = vpack.c.b16 %v107_v3, %v107_v3  ;;  %v331_v13 = vld [vmem:[%s482_s1 + $0x50] sm:$0xff]  ;;  %v189_v14 = vld [vmem:[%s484_s3 + $0x60] sm:$0xff]  ;;  %v324_v15 = vld [vmem:[%s482_s1 + $0x18] sm:$0xff] }
   0x7   :  { %198 = vmatpush.msra.mxu2 %v191_v10  ;;  %v330_v16 = vld [vmem:[%s482_s1 + $0x48] sm:$0xff]  ;;  %v323_v17 = vld [vmem:[%s482_s1 + $0x10] sm:$0xff]  ;;  %v329_v18 = vld [vmem:[%s482_s1 + $0x40] sm:$0xff] }
   0x8   :  { %v139_v6 = vsel %vm137_vm0, %v120_v5, 0  ;;  %142 = vmatpush.bf16.msra.mxu0 %v327_v4  ;;  %v24_v19 = vld [vmem:[%s481_s0 + $0x8] sm:$0xff]  ;;  %v26_v20 = vld [vmem:[%s481_s0 + $0x18] sm:$0xff]  ;;  %v321_v23 = vld [vmem:[%s482_s1] sm:$0xff] }
   0x9   :  { %158 = vmatpush.bf16.msra.mxu1 %v139_v6  ;;  %199 = vmatpush.msra.mxu2 %v190_v11  ;;  %v28_v21 = vpack.c.bf16 %v26_v20, %v24_v19  ;;  %v322_v22 = vld [vmem:[%s482_s1 + $0x8] sm:$0xff]  ;;  %v23_v24 = vld [vmem:[%s481_s0] sm:$0xff]  ;;  %v25_v25 = vld [vmem:[%s481_s0 + $0x10] sm:$0xff] }
   0xa   :  { %v27_v26 = vpack.c.bf16 %v25_v25, %v23_v24  ;;  %v188_v27 = vld [vmem:[%s484_s3 + $0x58] sm:$0xff]  ;;  %v187_v28 = vld [vmem:[%s484_s3 + $0x50] sm:$0xff]  ;;  %v186_v29 = vld [vmem:[%s484_s3 + $0x48] sm:$0xff] }
   0xb   :  { %200 = vmatpush.msra.mxu2 %v189_v14  ;;  %v185_v30 = vld [vmem:[%s484_s3 + $0x40] sm:$0xff]  ;;  %v184_v31 = vld [vmem:[%s484_s3 + $0x38] sm:$0xff]  ;;  %v183_v32 = vld [vmem:[%s484_s3 + $0x30] sm:$0xff] }
   0xc   :  { %143 = vmatpush.bf16.msra.mxu0 %v326_v8  ;;  %v182_v33 = vld [vmem:[%s484_s3 + $0x28] sm:$0xff]  ;;  %v181_v34 = vld [vmem:[%s484_s3 + $0x20] sm:$0xff]  ;;  %v180_v35 = vld [vmem:[%s484_s3 + $0x18] sm:$0xff] }
   0xd   :  { %159 = vmatpush.bf16.msra.mxu1 %v332_v9  ;;  %201 = vmatpush.msra.mxu2 %v188_v27  ;;  %v179_v36 = vld [vmem:[%s484_s3 + $0x10] sm:$0xff]  ;;  %v178_v37 = vld [vmem:[%s484_s3 + $0x8] sm:$0xff]  ;;  %v177_v38 = vld [vmem:[%s484_s3] sm:$0xff] }
   0xe   :  { %v333_v39 = vld [vmem:[%s483_s2] ss:$0 sm:$0xff] }
   0xf   :  { %202 = vmatpush.msra.mxu2 %v187_v28  ;;  %v334_v56 = vld [vmem:[#allocation2] ss:$0 sm:$0xff] }
  0x10   :  { %144 = vmatpush.bf16.msra.mxu0 %v325_v12 }
  0x11   :  { %160 = vmatpush.bf16.msra.mxu1 %v331_v13  ;;  %203 = vmatpush.msra.mxu2 %v186_v29 }
  0x13   :  { %204 = vmatpush.msra.mxu2 %v185_v30 }
  0x14   :  { %145 = vmatpush.bf16.msra.mxu0 %v324_v15 }
  0x15   :  { %161 = vmatpush.bf16.msra.mxu1 %v330_v16  ;;  %205 = vmatpush.msra.mxu2 %v184_v31 }
  0x17   :  { %206 = vmatpush.msra.mxu2 %v183_v32 }
  0x18   :  { %146 = vmatpush.bf16.msra.mxu0 %v323_v17 }
  0x19   :  { %162 = vmatpush.bf16.msra.mxu1 %v329_v18  ;;  %207 = vmatpush.msra.mxu2 %v182_v33 }
  0x1b   :  { %208 = vmatpush.msra.mxu2 %v181_v34 }
  0x1c   :  { %320 = vmatmul.msk.bf16.vlgmr.msra.gmra.mxu1 %vm133_vm1, %v28_v21  ;;  %147 = vmatpush.bf16.msra.mxu0 %v322_v22 }
  0x1d   :  { %209 = vmatpush.msra.mxu2 %v180_v35 }
  0x1f   :  { %210 = vmatpush.msra.mxu2 %v179_v36 }
  0x20   :  { %148 = vmatpush.bf16.msra.mxu0 %v321_v23 }
  0x21   :  { %211 = vmatpush.msra.mxu2 %v178_v37 }
  0x23   :  { %149 = vmatmul.bf16.vlgmr.msra.gmra.mxu0 %v27_v26  ;;  %212 = vmatpush.msra.mxu2 %v177_v38 }
  0x99   :  { %v164_v40 = vpop.f32.mrf.mxu1 }
  0xa0   :  { %v150_v41 = vpop.f32.mrf.mxu0 }
  0xa1   :  { %v151_v42 = vadd.f32 %v333_v39, %v150_v41  ;;  %v166_v47 = vpop.f32.mrf.mxu1 }
  0xa3   :  { %v165_v43 = vadd.f32 %v164_v40, %v151_v42 }
  0xa5   :  { %v169_v44 = vmul.f32 0.5, %v165_v43 }
  0xa7   :  { %335 = vtanh.f32 %v169_v44 }
  0xa8   :  { %v152_v45 = vpop.f32.mrf.mxu0 }
  0xa9   :  { %v153_v46 = vadd.f32 %v333_v39, %v152_v45 }
  0xab   :  { %v167_v48 = vadd.f32 %v166_v47, %v153_v46 }
  0xad   :  { %v336_v49 = vpop.eup %335  ;;  %v170_v50 = vmul.f32 0.5, %v167_v48 }
  0xae   :  { %v173_v51 = vadd.f32 1.0, %v336_v49 }
  0xaf   :  { %337 = vtanh.f32 %v170_v50 }
  0xb0   :  { %v175_v52 = vmul.f32 0.5, %v173_v51 }
  0xb2   :  { %213 = vmatmul.f32.vlgmr.msra.gmra.mxu2 %v175_v52 }
  0xb5   :  { %v338_v53 = vpop.eup %337 }
  0xb6   :  { %v174_v54 = vadd.f32 1.0, %v338_v53 }
  0xb8   :  { %v176_v55 = vmul.f32 0.5, %v174_v54 }
  0xba   :  { %216 = vmatmul.f32.gmra.mxu2 %v176_v55 }
 0x135   :  { %v214_v57 = vpop.f32.mrf.mxu2 }
 0x136   :  { %v215_v58 = vadd.f32 %v334_v56, %v214_v57 }
 0x138   :  { %v220_v59 = vmul.f32 0.5, %v215_v58 }
 0x13a   :  { %339 = vtanh.f32 %v220_v59 }
 0x13d   :  { %v217_v60 = vpop.f32.mrf.mxu2 }
 0x13e   :  { %v218_v61 = vadd.f32 %v334_v56, %v217_v60 }
 0x140   :  { %v340_v62 = vpop.eup %339  ;;  %v221_v63 = vmul.f32 0.5, %v218_v61 }
 0x141   :  { %v224_v0 = vadd.f32 1.0, %v340_v62 }
 0x142   :  { %341 = vtanh.f32 %v221_v63 }
 0x143   :  { %v226_v1 = vmul.f32 0.5, %v224_v0 }
 0x145   :  { %229 = vst.msk [vmem:[#allocation3] sm:$0xff] %vm228_vm2, %v226_v1 }
 0x148   :  { %v342_v2 = vpop.eup %341 }
 0x14c   :  { %v261_v3 = vld [vmem:[#allocation3] sm:$0xff] }
 0x14d   :  { %262 = vst [vmem:[%s486_s5] sm:$0xff] %v261_v3 }

</bundles_post_ra>
